<compile_context>
chip_gen: v7x
topology: tpu7x:2x2x1
jax: 0.10.0
libtpu: 0.0.40
codegen_flags: <defaults>
</compile_context>

<pallas_src>
import math

import jax
import jax.numpy as jnp
from jax.experimental import pallas as pl
from jax.experimental.pallas import tpu as pltpu

INT16_MIN = -32768


def _round_up(a, b):
    return (a + b - 1) // b * b


# ----------------------------------------------------------------------------
# Weight unpack / dequant (one-time parameter setup, plain JAX)
# ----------------------------------------------------------------------------
def unpack_weight(qweight, scales, cherry_indices_stored, cherry_weight,
                  *, w_bits, group_size, in_features, num_normal):
    """Mirrors QuantLinear.unpack() for w_bits in {2, 4, 8}."""
    out_features = qweight.shape[0]
    # Bit-unpack: each packed int8 byte holds 8 // w_bits values (low bits first).
    shifts = jnp.arange(0, 8, w_bits, dtype=jnp.int32)                   # (8//w_bits,)
    qbytes = qweight.astype(jnp.int32) & 0xFF                            # unsigned byte view
    vals = (qbytes[:, :, None] >> shifts[None, None, :]) & (2 ** w_bits - 1)
    vals = vals.reshape(out_features, num_normal)
    vals = vals + (-(2 ** (w_bits - 1)))                                 # += iinfo(w_bits).min

    # Per-group scales, repeat_interleave along columns, truncate to num_normal.
    s = jnp.repeat(scales.astype(jnp.float32), group_size, axis=1)[:, :num_normal]
    normal_dq = vals.astype(jnp.float32) * s                             # quantizer.dequantize

    cherry_idx = cherry_indices_stored.astype(jnp.int32) - INT16_MIN     # restore true indices
    cherry_w = cherry_weight.astype(jnp.float32)

    def assemble_row(cidx, cw, nw):
        # non-cherry columns (in increasing column order) get nw in order;
        # cherry columns get cw.
        mask = jnp.ones((in_features,), dtype=bool).at[cidx].set(False)
        pos = jnp.cumsum(mask) - 1                                       # rank among normals
        row = jnp.where(mask, nw[pos], 0.0)
        row = row.at[cidx].set(cw)
        return row

    weight = jax.vmap(assemble_row)(cherry_idx, cherry_w, normal_dq)
    return weight                                                        # (O, in_features) f32


# ----------------------------------------------------------------------------
# Pallas kernel: out = x @ W^T + bias   (tiled bf16 matmul, f32 accumulator)
# ----------------------------------------------------------------------------
def _qlinear_matmul_kernel(x_ref, wt_ref, b_ref, o_ref, acc_ref):
    @pl.when(pl.program_id(2) == 0)
    def _():
        # Fold bias into the accumulator init (broadcast (1, tn) -> (tm, tn)).
        acc_ref[...] = jnp.broadcast_to(b_ref[...], acc_ref.shape).astype(jnp.float32)

    acc_ref[...] += jnp.dot(x_ref[...], wt_ref[...],
                            preferred_element_type=jnp.float32)

    @pl.when(pl.program_id(2) == pl.num_programs(2) - 1)
    def _():
        o_ref[...] = acc_ref[...].astype(o_ref.dtype)


def pallas_linear(x2d, wt, bias_row, *, tm=None, tn=None, tk=None,
                  out_dtype=jnp.bfloat16):
    """x2d: (M, K) bf16, wt: (K, N) bf16, bias_row: (1, N) f32 -> (M, N) out_dtype."""
    M, K = x2d.shape
    K2, N = wt.shape
    assert K2 == K

    # Sublane-aligned tm (bf16 -> multiple of 16), lane-aligned tn/tk (128),
    # capped so double-buffered tiles + the f32 accumulator stay a few MiB
    # (fits the 32 MiB scoped default on v5e/v6e and v7x's 64 MiB VMEM).
    tm = tm if tm is not None else min(_round_up(M, 16), 256)
    tn = tn if tn is not None else min(_round_up(N, 128), 512)
    tk = tk if tk is not None else min(_round_up(K, 128), 512)

    Mp, Np, Kp = _round_up(M, tm), _round_up(N, tn), _round_up(K, tk)
    if (Mp, Kp) != (M, K):
        x2d = jnp.pad(x2d, ((0, Mp - M), (0, Kp - K)))
    if (Kp, Np) != (K, N):
        wt = jnp.pad(wt, ((0, Kp - K), (0, Np - N)))
    if Np != N:
        bias_row = jnp.pad(bias_row, ((0, 0), (0, Np - N)))

    grid = (Mp // tm, Np // tn, Kp // tk)
    itemsize = jnp.dtype(jnp.bfloat16).itemsize
    cost = pl.CostEstimate(
        flops=2 * Mp * Np * Kp,
        transcendentals=0,
        bytes_accessed=(Mp * Kp + Kp * Np + Mp * Np) * itemsize + Np * 4,
    )

    out = pl.pallas_call(
        _qlinear_matmul_kernel,
        out_shape=jax.ShapeDtypeStruct((Mp, Np), out_dtype),
        grid_spec=pltpu.PrefetchScalarGridSpec(
            num_scalar_prefetch=0,
            grid=grid,
            in_specs=[
                pl.BlockSpec((tm, tk), lambda i, j, k: (i, k)),   # x tile   (bf16)
                pl.BlockSpec((tk, tn), lambda i, j, k: (k, j)),   # W^T tile (bf16)
                pl.BlockSpec((1, tn), lambda i, j, k: (0, j)),    # bias tile (f32)
            ],
            out_specs=pl.BlockSpec((tm, tn), lambda i, j, k: (i, j)),
            scratch_shapes=[pltpu.VMEM((tm, tn), jnp.float32)],
        ),
        compiler_params=pltpu.CompilerParams(
            dimension_semantics=("parallel", "parallel", "arbitrary")),
        cost_estimate=cost,
    )(x2d, wt, bias_row)

    if (Mp, Np) != (M, N):
        out = out[:M, :N]
    return out


# ----------------------------------------------------------------------------
# QuantLinear forward wrapper (weight assembly hoisted out; bf16 W^T cached)
# ----------------------------------------------------------------------------
def prepare_quant_linear(params, *, w_bits, group_size, in_features, num_normal):
    """One-time: assemble dense W (f32) and return (W_f32, W^T bf16, bias f32 row)."""
    W = unpack_weight(
        params["qweight"], params["scales"], params["cherry_indices"],
        params["cherry_weight"], w_bits=w_bits, group_size=group_size,
        in_features=in_features, num_normal=num_normal)                  # (O, K) f32
    wt_bf16 = W.T.astype(jnp.bfloat16)                                   # (K, O) lane-dense
    bias_row = params["bias"].astype(jnp.float32).reshape(1, -1)         # (1, O) f32
    return W, wt_bf16, bias_row


@jax.jit
def quant_linear_forward(x, wt_bf16, bias_row_f32):
    lead = x.shape[:-1]
    K = x.shape[-1]
    N = wt_bf16.shape[1]
    xm = x.reshape(-1, K).astype(jnp.bfloat16)                           # bf16 MXU operand
    out = pallas_linear(xm, wt_bf16, bias_row_f32)                       # (M, N) bf16
    # torch module computes into fp16 buffers; final cast to fp16 to match.
    return out.reshape(*lead, N).astype(jnp.float16)


# ----------------------------------------------------------------------------
# Deterministic synthetic parameter construction (mirrors __init__ shapes)
# ----------------------------------------------------------------------------
def make_params(key, *, w_bits, group_size, cherry_fraction, in_features, out_features):
    num_cherries = math.ceil(in_features * cherry_fraction) // 8 * 8
    num_normal = in_features - num_cherries
    assert in_features % 8 == 0 and out_features % 8 == 0 and num_normal % 8 == 0

    k_qw, k_sc, k_ci, k_cw, k_b = jax.random.split(key, 5)

    qweight = jax.random.randint(
        k_qw, (out_features, num_normal // 8 * w_bits), -128, 128,
        dtype=jnp.int32).astype(jnp.int8)
    scales = (jax.random.uniform(
        k_sc, (out_features, math.ceil(num_normal / group_size)),
        minval=0.01, maxval=0.1)).astype(jnp.float16)
    # per-output-row distinct cherry column indices, stored offset by int16 min
    row_keys = jax.random.split(k_ci, out_features)
    cherry_true = jax.vmap(
        lambda k: jax.random.permutation(k, in_features)[:num_cherries])(row_keys)
    cherry_indices = (cherry_true.astype(jnp.int32) + INT16_MIN).astype(jnp.int16)
    cherry_weight = (jax.random.normal(
        k_cw, (out_features, num_cherries)) * 0.05).astype(jnp.float16)
    bias = (jax.random.normal(k_b, (out_features,)) * 0.1).astype(jnp.float16)

    params = dict(qweight=qweight, scales=scales, cherry_indices=cherry_indices,
                  cherry_weight=cherry_weight, bias=bias)
    return params, num_normal


if __name__ == "__main__":
    # Small config consistent with the module's constraints (features % 8 == 0).
    batch, seq = 2, 8
    in_features, out_features = 32, 32
    w_bits, group_size, cherry_fraction = 4, 8, 0.25

    key = jax.random.PRNGKey(0)
    k_params, k_x = jax.random.split(key)
    params, num_normal = make_params(
        k_params, w_bits=w_bits, group_size=group_size,
        cherry_fraction=cherry_fraction, in_features=in_features,
        out_features=out_features)

    x = (jax.random.normal(k_x, (batch, seq, in_features)) * 0.5).astype(jnp.float16)

    # One-time weight assembly (reused across forward calls in a real model).
    W, wt_bf16, bias_row = prepare_quant_linear(
        params, w_bits=w_bits, group_size=group_size,
        in_features=in_features, num_normal=num_normal)

    out = quant_linear_forward(x, wt_bf16, bias_row)
    out = jax.block_until_ready(out)

    # Pure-JAX reference of the same forward (x @ W.T + bias) in f32.
    ref = (x.reshape(-1, in_features).astype(jnp.float32) @ W.T
           + params["bias"].astype(jnp.float32)[None, :])
    ref = ref.reshape(batch, seq, out_features)

    assert out.shape == (batch, seq, out_features)
    assert out.dtype == jnp.float16
    assert jnp.allclose(out.astype(jnp.float32), ref, atol=2e-2, rtol=2e-2)
    print("KERNEL_OK")
</pallas_src>

<mosaic_0001>
module attributes {stable_mosaic.version = 11 : i64} {
  func.func @_qlinear_matmul_kernel(%arg0: i32, %arg1: i32, %arg2: i32, %arg3: memref<16x128xbf16, #tpu.memory_space<vmem>>, %arg4: memref<128x128xbf16, #tpu.memory_space<vmem>>, %arg5: memref<1x128xf32, #tpu.memory_space<vmem>>, %arg6: memref<16x128xbf16, #tpu.memory_space<vmem>>, %arg7: memref<16x128xf32, #tpu.memory_space<vmem>>) attributes {dimension_semantics = [#tpu.dimension_semantics<parallel>, #tpu.dimension_semantics<parallel>, #tpu.dimension_semantics<arbitrary>], iteration_bounds = array<i64: 1, 1, 1>, scalar_prefetch = 0 : i64, scratch_operands = 1 : i64, tpu.core_type = #tpu.core_type<tc>, window_params = [{transform_indices = @transform_0, window_bounds = array<i64: 16, 128>}, {transform_indices = @transform_1, window_bounds = array<i64: 128, 128>}, {transform_indices = @transform_2, window_bounds = array<i64: 1, 128>}, {transform_indices = @transform_3, window_bounds = array<i64: 16, 128>}]} {
    %c0_i32 = arith.constant 0 : i32
    %0 = arith.cmpi eq, %arg2, %c0_i32 : i32
    %1 = arith.extui %0 : i1 to i32
    %c0_i32_0 = arith.constant 0 : i32
    %2 = arith.cmpi ne, %1, %c0_i32_0 : i32
    scf.if %2 {
      %c0_10 = arith.constant 0 : index
      %c0_11 = arith.constant 0 : index
      %12 = vector.load %arg5[%c0_10, %c0_11] : memref<1x128xf32, #tpu.memory_space<vmem>>, vector<1x128xf32>
      %13 = vector.shape_cast %12 : vector<1x128xf32> to vector<1x128xf32>
      %14 = vector.broadcast %13 : vector<1x128xf32> to vector<16x128xf32>
      %c0_12 = arith.constant 0 : index
      %c0_13 = arith.constant 0 : index
      %15 = vector.load %arg7[%c0_12, %c0_13] : memref<16x128xf32, #tpu.memory_space<vmem>>, vector<16x128xf32>
      tpu.vector_store %arg7[%c0_12, %c0_13], %14 {strides = array<i32>} : memref<16x128xf32, #tpu.memory_space<vmem>>, vector<16x128xf32>,
    } else {
    }
    %c0 = arith.constant 0 : index
    %c0_1 = arith.constant 0 : index
    %3 = vector.load %arg7[%c0, %c0_1] : memref<16x128xf32, #tpu.memory_space<vmem>>, vector<16x128xf32>
    %c0_2 = arith.constant 0 : index
    %c0_3 = arith.constant 0 : index
    %4 = vector.load %arg3[%c0_2, %c0_3] : memref<16x128xbf16, #tpu.memory_space<vmem>>, vector<16x128xbf16>
    %c0_4 = arith.constant 0 : index
    %c0_5 = arith.constant 0 : index
    %5 = vector.load %arg4[%c0_4, %c0_5] : memref<128x128xbf16, #tpu.memory_space<vmem>>, vector<128x128xbf16>
    %cst = arith.constant dense<0.000000e+00> : vector<16x128xf32>
    %6 = tpu.matmul %4, %5, %cst {dimension_numbers = #tpu.dot_dimension_numbers<[1], [0], [0], [1], [0, 0, 1, 1], [], []>} : vector<16x128xbf16>, vector<128x128xbf16>, vector<16x128xf32> -> vector<16x128xf32>
    %7 = arith.addf %3, %6 : vector<16x128xf32>
    %c0_6 = arith.constant 0 : index
    %c0_7 = arith.constant 0 : index
    %8 = vector.load %arg7[%c0_6, %c0_7] : memref<16x128xf32, #tpu.memory_space<vmem>>, vector<16x128xf32>
    tpu.vector_store %arg7[%c0_6, %c0_7], %7 {strides = array<i32>} : memref<16x128xf32, #tpu.memory_space<vmem>>, vector<16x128xf32>,
    %c0_i32_8 = arith.constant 0 : i32
    %9 = arith.cmpi eq, %arg2, %c0_i32_8 : i32
    %10 = arith.extui %9 : i1 to i32
    %c0_i32_9 = arith.constant 0 : i32
    %11 = arith.cmpi ne, %10, %c0_i32_9 : i32
    scf.if %11 {
      %c0_10 = arith.constant 0 : index
      %c0_11 = arith.constant 0 : index
      %12 = vector.load %arg7[%c0_10, %c0_11] : memref<16x128xf32, #tpu.memory_space<vmem>>, vector<16x128xf32>
      %13 = arith.truncf %12 : vector<16x128xf32> to vector<16x128xbf16>
      %c0_12 = arith.constant 0 : index
      %c0_13 = arith.constant 0 : index
      %14 = vector.load %arg6[%c0_12, %c0_13] : memref<16x128xbf16, #tpu.memory_space<vmem>>, vector<16x128xbf16>
      tpu.vector_store %arg6[%c0_12, %c0_13], %13 {strides = array<i32>} : memref<16x128xbf16, #tpu.memory_space<vmem>>, vector<16x128xbf16>,
    } else {
    }
    return
  }
  func.func @transform_0(%arg0: i32, %arg1: i32, %arg2: i32) -> (i32, i32) {
    %c0_i32 = arith.constant 0 : i32
    return %arg0, %arg2 : i32, i32
  }
  func.func @transform_1(%arg0: i32, %arg1: i32, %arg2: i32) -> (i32, i32) {
    %c0_i32 = arith.constant 0 : i32
    return %arg2, %arg1 : i32, i32
  }
  func.func @transform_2(%arg0: i32, %arg1: i32, %arg2: i32) -> (i32, i32) {
    %c0_i32 = arith.constant 0 : i32
    %c0_i32_0 = arith.constant 0 : i32
    return %c0_i32, %arg1 : i32, i32
  }
  func.func @transform_3(%arg0: i32, %arg1: i32, %arg2: i32) -> (i32, i32) {
    %c0_i32 = arith.constant 0 : i32
    return %arg0, %arg1 : i32, i32
  }
}

</mosaic_0001>

<bundles_post_ra>
// kernel: quant_linear_forward.1
= control target key start
LH: loop header
LB: loop body
LE: loop exit
PB: predicated region body
PF: predicated region fallthrough
CT: control target
= control target key end

     0   :  { %v225_v0 = vmov 0.0   ;;  %vm226_vm0 = vmmov 0   ;;  %s280_s1 = inlined_call_operand.vmem [shape: bf16[128,128], index: 1, kind: input, shape index: {}]   ;;  %s281_s0 = inlined_call_operand.vmem [shape: bf16[16,128], index: 0, kind: input, shape index: {}]   ;;  %s282_s2 = inlined_call_operand.vmem [shape: f32[1,128], index: 2, kind: input, shape index: {}]   ;;  %s283_s3 = inlined_call_operand.vmem [shape: bf16[16,128], index: 3, kind: output, shape index: {}]  }
   0x1   :  { %194 = vmatprep.subr.bf16.mxu0 %v225_v0  ;;  %v216_v1 = vld [vmem:[%s280_s1] sm:$0xff]   ;;  %210 = vmatprep.mubr.msk.bf16.mxu0 %vm226_vm0, %v225_v0  ;;  %v217_v2 = vld [vmem:[%s280_s1 + $0x8] sm:$0xff]   ;;  %v218_v3 = vld [vmem:[%s280_s1 + $0x10] sm:$0xff]  }
   0x2   :  { %195 = vmatpush3.bf16.msra.mxu0 %v216_v1  ;;  %v219_v4 = vld [vmem:[%s280_s1 + $0x18] sm:$0xff]   ;;  %v220_v5 = vld [vmem:[%s280_s1 + $0x20] sm:$0xff]   ;;  %v221_v6 = vld [vmem:[%s280_s1 + $0x28] sm:$0xff]  }
   0x3   :  { %196 = vmatprep.subr.bf16.mxu0 %v225_v0  ;;  %v222_v7 = vld [vmem:[%s280_s1 + $0x30] sm:$0xff]   ;;  %v223_v8 = vld [vmem:[%s280_s1 + $0x38] sm:$0xff]   ;;  %v224_v9 = vld [vmem:[%s281_s0] sm:$0xff]  }
   0x4   :  { %v166_v10 = vld [vmem:[%s282_s2] ss:$0 sm:$0xff] }
   0x6   :  { %197 = vmatpush3.bf16.msra.mxu0 %v217_v2 }
   0x7   :  { %198 = vmatprep.subr.bf16.mxu0 %v225_v0 }
   0xa   :  { %199 = vmatpush3.bf16.msra.mxu0 %v218_v3 }
   0xb   :  { %200 = vmatprep.subr.bf16.mxu0 %v225_v0 }
   0xe   :  { %201 = vmatpush3.bf16.msra.mxu0 %v219_v4 }
   0xf   :  { %202 = vmatprep.subr.bf16.mxu0 %v225_v0 }
  0x12   :  { %203 = vmatpush3.bf16.msra.mxu0 %v220_v5 }
  0x13   :  { %204 = vmatprep.subr.bf16.mxu0 %v225_v0 }
  0x16   :  { %205 = vmatpush3.bf16.msra.mxu0 %v221_v6 }
  0x17   :  { %206 = vmatprep.subr.bf16.mxu0 %v225_v0 }
  0x1a   :  { %207 = vmatpush3.bf16.msra.mxu0 %v222_v7 }
  0x1b   :  { %208 = vmatprep.subr.bf16.mxu0 %v225_v0 }
  0x1e   :  { %209 = vmatpush3.bf16.msra.mxu0 %v223_v8 }
  0x21   :  { %211 = vmatmul.mubr.bf16.vlgmr.msra.gmra.mrb[0].mxu0 %v224_v9 }
  0xf4   :  { %v136_v11 = vpop.f32.mrb[0].mxu0 }
  0xf5   :  { %v212_v12 = vpop.f32.mrb[1].mxu0  ;;  %v143_v14 = vadd.f32 %v166_v10, %v136_v11 }
  0xf6   :  { %v139_v13 = vpop.f32.mrb[2].mxu0 }
  0xf7   :  { %v144_v15 = vadd.f32 %v166_v10, %v139_v13  ;;  %v213_v16 = vpop.f32.mrb[3].mxu0 }
  0xf9   :  { %v183_v17 = vpack.c.bf16 %v144_v15, %v143_v14 }
  0xfb   :  { %184 = vst [vmem:[%s283_s3] sm:$0xff] %v183_v17  }

</bundles_post_ra>
